<compile_context>
chip_gen: v7x
topology: tpu7x:2x2x1
jax: 0.10.0
libtpu: 0.0.40
codegen_flags: <defaults>
</compile_context>

<pallas_src>
import functools

import jax
import jax.numpy as jnp
from jax.experimental import pallas as pl
from jax.experimental.pallas import tpu as pltpu

_LANE = 128      # TPU vreg lane width (last dim)
_SUBLANE = 8     # TPU vreg sublane count (second-to-last dim)


def _round_up(x, m):
    return (x + m - 1) // m * m


def _cdiv(a, b):
    return (a + b - 1) // b


def _device_kind():
    try:
        return jax.devices()[0].device_kind.lower()
    except Exception:
        return ""


def _num_tensorcores():
    # v7x has 2 TensorCores per chip; v5e/v6e have 1. Best-effort detection.
    kind = _device_kind()
    return 2 if "v7" in kind else 1


def _vmem_budget_bytes():
    # ~75% of physical VMEM (generation-aware); conservative 64 MiB fallback.
    try:
        cap = int(pltpu.get_tpu_info().vmem_capacity_bytes)
    except Exception:
        cap = 64 * 1024 * 1024
    return (cap * 3) // 4


# ----------------------------------------------------------------------------- kernel
def _make_deep_kernel(num_layers):
    """Fused kernel: num_layers x [matmul -> bias -> ReLU]; the final layer also
    applies its explicit BN(eval) affine (hidden-layer BN affines were folded
    into the next layer's weight/bias at pack time).

    refs layout: (x_ref, w0_ref, aff0_ref, ..., w_{L-1}_ref, aff_{L-1}_ref, o_ref)
      x_ref   : (TB, IN_pad)       activation tile, compute dtype
      w_ref   : (IN_pad, OUT_pad)  BN-folded weight (zero padded), compute dtype
      aff_ref : hidden layers (1, OUT_pad) = [bias]             (epilogue dtype)
                final layer   (3, OUT_pad) = [bias,scale,shift] (f32)
      o_ref   : (TB, OUT_pad)      f32 output tile
    """

    def kernel(*refs):
        x_ref = refs[0]
        o_ref = refs[-1]
        h = x_ref[...]
        for l in range(num_layers):                       # unrolled at trace time
            w = refs[1 + 2 * l][...]                      # VMEM-resident weight
            aff = refs[2 + 2 * l][...]
            # MXU matmul in the weight dtype (bf16 fast path), f32 accumulation.
            y = jnp.dot(h.astype(w.dtype), w, preferred_element_type=jnp.float32)
            # Epilogue in aff's dtype: bf16 hidden layers on v6e/v7x (bf16 VALU),
            # f32 on v5e and on the final layer.
            y = y.astype(aff.dtype)
            h = jnp.maximum(y + aff[0:1, :], 0.0)         # bias + ReLU
            if l == num_layers - 1:                       # final BN(eval) affine
                h = h * aff[1:2, :] + aff[2:3, :]
        o_ref[...] = h.astype(o_ref.dtype)

    return kernel


# ----------------------------------------------------------------------------- wrapper
@functools.partial(jax.jit, static_argnames=("out_dim", "batch_tile"))
def deep_forward_pallas(x, packed_params, *, out_dim, batch_tile=512):
    """Fused forward for the whole deep tower in a single pallas_call."""
    B, in_dim = x.shape
    in_pad = packed_params[0][0].shape[0]
    out_pad = packed_params[-1][0].shape[1]
    assert in_dim <= in_pad
    compute_dtype = packed_params[0][0].dtype

    num_cores = _num_tensorcores()
    vmem_budget = _vmem_budget_bytes()

    # --- batch tiling --------------------------------------------------------
    # Pad the batch only to a sublane multiple (8) and let the grid be cdiv: the
    # ragged last block (if any) reads unspecified rows past the edge and its
    # out-of-bounds writes are masked.  Safe because every output row depends
    # only on its own input row and pad rows are sliced off -- do NOT add
    # cross-row reductions to this kernel.
    b_pad = _round_up(B, _SUBLANE)
    tb_target = max(_SUBLANE, _round_up(batch_tile, _SUBLANE))
    if b_pad <= tb_target:
        # Small batch: balance real rows across TensorCores (v7x has 2).
        tb = _round_up(_cdiv(b_pad, num_cores), _SUBLANE) if num_cores > 1 else b_pad
    else:
        tb = tb_target
    tb = max(_SUBLANE, min(tb, b_pad))

    widest = max(in_pad, max(w.shape[1] for w, _ in packed_params))
    x_bytes = compute_dtype.itemsize
    param_bytes = sum(w.size * w.dtype.itemsize + a.size * a.dtype.itemsize
                      for w, a in packed_params)

    def _vmem_estimate(tile):
        act = 2 * tile * in_pad * x_bytes + 2 * tile * out_pad * 4  # dbl-buffered I/O
        live = 3 * tile * widest * 4                                # in-flight activations
        return act + live + 2 * param_bytes                        # resident params (x2 buf)

    # Shrink the batch tile if the estimate would blow the per-gen VMEM budget.
    while tb > _SUBLANE and _vmem_estimate(tb) > vmem_budget:
        tb = max(_SUBLANE, _round_up(tb // 2, _SUBLANE))

    # Residency guard: all-weights-resident must leave >=50% of budget for tiles.
    # TODO(synk): stream weights (layer grid axis / pltpu.emit_pipeline) instead
    # of failing when a very wide tower trips this guard.
    assert 2 * param_bytes <= vmem_budget // 2, "tower too wide for resident-weight kernel"

    grid = (_cdiv(b_pad, tb),)

    # Pad once in the wrapper: batch -> sublane multiple, features -> padded lane
    # width, and cast activations to the compute dtype so the per-step input DMA
    # is half-width on the bf16 path.  Padded feature lanes stay exactly zero
    # (padded weight rows/cols and epilogue entries are zero).
    x_p = jnp.pad(x.astype(compute_dtype), ((0, b_pad - B), (0, in_pad - in_dim)))

    in_specs = [pl.BlockSpec((tb, in_pad), lambda i: (i, 0))]
    flat_args = [x_p]
    for w, aff in packed_params:
        fin_p, fout_p = w.shape
        # Constant index maps -> parameters fetched once, VMEM-resident.
        in_specs.append(pl.BlockSpec((fin_p, fout_p), lambda i: (0, 0)))
        in_specs.append(pl.BlockSpec((aff.shape[0], fout_p), lambda i: (0, 0)))
        flat_args += [w, aff]

    out_specs = pl.BlockSpec((tb, out_pad), lambda i: (i, 0))

    vmem_limit = int(min(max(int(1.25 * _vmem_estimate(tb)), 16 * 1024 * 1024),
                         vmem_budget))

    out = pl.pallas_call(
        _make_deep_kernel(len(packed_params)),
        out_shape=jax.ShapeDtypeStruct((b_pad, out_pad), jnp.float32),
        grid_spec=pltpu.PrefetchScalarGridSpec(
            num_scalar_prefetch=0,
            grid=grid,
            in_specs=in_specs,
            out_specs=out_specs,
        ),
        compiler_params=pltpu.CompilerParams(
            dimension_semantics=("parallel",),
            vmem_limit_bytes=vmem_limit,
        ),
    )(*flat_args)

    return out[:B, :out_dim]


# ----------------------------------------------------------------------------- params
def init_deep_params(key, input_dim, out_dim, hidden_layers):
    """Deterministic parameter init mirroring the shapes of the PyTorch module."""
    layer_dims = []
    last = input_dim
    for h in hidden_layers:
        layer_dims.append((last, h))
        last = h
    layer_dims.append((last, out_dim))

    params = []
    eps = 1e-5
    for (fan_in, fan_out) in layer_dims:
        key, kw, kb, kg, kbt, km, kv = jax.random.split(key, 7)
        bound = 1.0 / jnp.sqrt(jnp.float32(fan_in))
        # Linear weight stored as (in, out) = PyTorch (out, in) transposed.
        w = jax.random.uniform(kw, (fan_in, fan_out), jnp.float32, -bound, bound)
        b = jax.random.uniform(kb, (1, fan_out), jnp.float32, -bound, bound)
        # BatchNorm1d parameters / running stats (deterministic, non-trivial).
        gamma = 1.0 + 0.1 * jax.random.normal(kg, (1, fan_out), jnp.float32)
        beta = 0.1 * jax.random.normal(kbt, (1, fan_out), jnp.float32)
        run_mean = 0.1 * jax.random.normal(km, (1, fan_out), jnp.float32)
        run_var = jnp.abs(1.0 + 0.1 * jax.random.normal(kv, (1, fan_out), jnp.float32))
        # BN(eval) as a single affine: y*scale + shift.
        scale = gamma / jnp.sqrt(run_var + eps)
        shift = beta - run_mean * scale
        params.append(dict(w=w, b=b, scale=scale, shift=shift))
    return params


def fold_bn_params(params):
    """Fold BN(eval) of layer l into layer l+1's weight/bias (exact in f32).

    (relu*s + t) @ W + b == relu @ (s^T * W) + (t @ W + b).
    Hidden layers return {w, b}; the final layer additionally keeps its own
    {scale, shift} to be applied explicitly after ReLU.
    """
    folded = []
    prev_scale = prev_shift = None
    for i, p in enumerate(params):
        w, b = p["w"], p["b"]
        if prev_scale is not None:
            w = p["w"] * prev_scale.T             # scale rows: (fin,fout)*(fin,1)
            b = p["b"] + prev_shift @ p["w"]      # (1,fout)
        entry = dict(w=w, b=b)
        if i == len(params) - 1:
            entry["scale"] = p["scale"]
            entry["shift"] = p["shift"]
        prev_scale, prev_shift = p["scale"], p["shift"]
        folded.append(entry)
    return folded


def pack_deep_params(params, compute_dtype=jnp.bfloat16, epilogue_dtype=None):
    """Fold BN forward, pad every layer to 128-lane multiples and pack the
    per-layer epilogue params.

    Hidden layers: aff = (1, OUT_pad) = [bias] in the epilogue dtype.
    Final layer:   aff = (3, OUT_pad) = [bias, scale, shift] in f32.
    Zero padding keeps results exact: padded weight rows/cols and epilogue
    entries are zero, so padded lanes stay zero through every layer.
    """
    if epilogue_dtype is None:
        epilogue_dtype = compute_dtype
    folded = fold_bn_params(params)
    packed = []
    for i, p in enumerate(folded):
        fin, fout = p["w"].shape
        fin_p, fout_p = _round_up(fin, _LANE), _round_up(fout, _LANE)
        w = jnp.zeros((fin_p, fout_p), compute_dtype)
        w = w.at[:fin, :fout].set(p["w"].astype(compute_dtype))
        if i == len(folded) - 1:
            aff = jnp.zeros((3, fout_p), jnp.float32)
            aff = aff.at[0, :fout].set(p["b"][0])
            aff = aff.at[1, :fout].set(p["scale"][0])
            aff = aff.at[2, :fout].set(p["shift"][0])
        else:
            aff = jnp.zeros((1, fout_p), epilogue_dtype)
            aff = aff.at[0, :fout].set(p["b"][0].astype(epilogue_dtype))
        packed.append((w, aff))
    return packed


# ----------------------------------------------------------------------------- references
def deep_forward_ref(x, params, precision=None):
    """Pure-JAX eval-mode reference of the original (unfolded) module."""
    h = x
    for p in params:
        y = jnp.dot(h, p["w"], precision=precision) + p["b"]
        h = jnp.maximum(y, 0.0) * p["scale"] + p["shift"]
    return h


def deep_forward_folded_ref(x, folded, precision=None):
    """Pure-JAX reference of the BN-folded formulation (same math, reordered)."""
    h = x
    for i, p in enumerate(folded):
        y = jnp.dot(h, p["w"], precision=precision) + p["b"]
        h = jnp.maximum(y, 0.0)
        if i == len(folded) - 1:
            h = h * p["scale"] + p["shift"]
    return h


# ----------------------------------------------------------------------------- main
if __name__ == "__main__":
    key = jax.random.PRNGKey(0)
    batch = 260                 # ragged batch -> exercises cdiv / pad-and-slice path
    input_dim = 32
    hidden_layers = [64, 32]
    out_dim = 16

    key, kx, kp = jax.random.split(key, 3)
    x = jax.random.normal(kx, (batch, input_dim), jnp.float32)
    params = init_deep_params(kp, input_dim, out_dim, hidden_layers)

    hp = jax.lax.Precision.HIGHEST
    ref = deep_forward_ref(x, params, precision=hp)

    # 1) BN-fold correctness: pure JAX f32, highest precision -> tight tolerance.
    fold_ref = deep_forward_folded_ref(x, fold_bn_params(params), precision=hp)
    assert jnp.allclose(fold_ref, ref, atol=1e-5, rtol=1e-5), \
        float(jnp.max(jnp.abs(fold_ref - ref)))

    kind = _device_kind()
    # bf16 epilogue/activations on v6e/v7x (bf16 VALU); keep f32 epilogue on v5e.
    epi_dtype = jnp.float32 if "v5" in kind else jnp.bfloat16

    # 2) Fast path: bf16 MXU inputs + bf16 hidden epilogue, f32 accumulation and
    #    f32 final-layer epilogue.  Compared against the f32 ground truth.
    packed_bf16 = pack_deep_params(params, jnp.bfloat16, epilogue_dtype=epi_dtype)
    out_bf16 = jax.block_until_ready(
        deep_forward_pallas(x, packed_bf16, out_dim=out_dim, batch_tile=512))
    assert out_bf16.shape == (batch, out_dim), out_bf16.shape
    assert jnp.allclose(out_bf16, ref, atol=3e-2, rtol=3e-2), \
        float(jnp.max(jnp.abs(out_bf16 - ref)))

    # 3) Full-precision sanity check (f32 weights/activations/epilogue).
    packed_f32 = pack_deep_params(params, jnp.float32, epilogue_dtype=jnp.float32)
    out_f32 = jax.block_until_ready(
        deep_forward_pallas(x, packed_f32, out_dim=out_dim, batch_tile=512))
    assert jnp.allclose(out_f32, ref, atol=5e-3, rtol=5e-3), \
        float(jnp.max(jnp.abs(out_f32 - ref)))

    print("KERNEL_OK")
</pallas_src>

<mosaic_0001>
module attributes {stable_mosaic.version = 11 : i64} {
  func.func @kernel(%arg0: i32, %arg1: memref<264x128xbf16, #tpu.memory_space<vmem>>, %arg2: memref<128x128xbf16, #tpu.memory_space<vmem>>, %arg3: memref<1x128xbf16, #tpu.memory_space<vmem>>, %arg4: memref<128x128xbf16, #tpu.memory_space<vmem>>, %arg5: memref<1x128xbf16, #tpu.memory_space<vmem>>, %arg6: memref<128x128xbf16, #tpu.memory_space<vmem>>, %arg7: memref<3x128xf32, #tpu.memory_space<vmem>>, %arg8: memref<264x128xf32, #tpu.memory_space<vmem>>) attributes {dimension_semantics = [#tpu.dimension_semantics<parallel>], iteration_bounds = array<i64: 1>, scalar_prefetch = 0 : i64, scratch_operands = 0 : i64, tpu.core_type = #tpu.core_type<tc>, window_params = [{transform_indices = @transform_0, window_bounds = array<i64: 264, 128>}, {pipeline_mode = #tpu.pipeline_mode<synchronous>, transform_indices = @transform_1, window_bounds = array<i64: 128, 128>}, {pipeline_mode = #tpu.pipeline_mode<synchronous>, transform_indices = @transform_2, window_bounds = array<i64: 1, 128>}, {pipeline_mode = #tpu.pipeline_mode<synchronous>, transform_indices = @transform_3, window_bounds = array<i64: 128, 128>}, {pipeline_mode = #tpu.pipeline_mode<synchronous>, transform_indices = @transform_4, window_bounds = array<i64: 1, 128>}, {pipeline_mode = #tpu.pipeline_mode<synchronous>, transform_indices = @transform_5, window_bounds = array<i64: 128, 128>}, {pipeline_mode = #tpu.pipeline_mode<synchronous>, transform_indices = @transform_6, window_bounds = array<i64: 3, 128>}, {transform_indices = @transform_7, window_bounds = array<i64: 264, 128>}]} {
    %c0 = arith.constant 0 : index
    %c0_0 = arith.constant 0 : index
    %0 = vector.load %arg1[%c0, %c0_0] : memref<264x128xbf16, #tpu.memory_space<vmem>>, vector<264x128xbf16>
    %c0_1 = arith.constant 0 : index
    %c0_2 = arith.constant 0 : index
    %1 = vector.load %arg2[%c0_1, %c0_2] : memref<128x128xbf16, #tpu.memory_space<vmem>>, vector<128x128xbf16>
    %c0_3 = arith.constant 0 : index
    %c0_4 = arith.constant 0 : index
    %2 = vector.load %arg3[%c0_3, %c0_4] : memref<1x128xbf16, #tpu.memory_space<vmem>>, vector<1x128xbf16>
    %cst = arith.constant dense<0.000000e+00> : vector<264x128xf32>
    %3 = tpu.matmul %0, %1, %cst {dimension_numbers = #tpu.dot_dimension_numbers<[1], [0], [0], [1], [0, 0, 1, 1], [], []>} : vector<264x128xbf16>, vector<128x128xbf16>, vector<264x128xf32> -> vector<264x128xf32>
    %4 = arith.truncf %3 : vector<264x128xf32> to vector<264x128xbf16>
    %5 = vector.broadcast %2 : vector<1x128xbf16> to vector<264x128xbf16>
    %6 = arith.addf %4, %5 : vector<264x128xbf16>
    %cst_5 = arith.constant 0.000000e+00 : bf16
    %7 = vector.broadcast %cst_5 : bf16 to vector<264x128xbf16>
    %8 = arith.maximumf %6, %7 : vector<264x128xbf16>
    %c0_6 = arith.constant 0 : index
    %c0_7 = arith.constant 0 : index
    %9 = vector.load %arg4[%c0_6, %c0_7] : memref<128x128xbf16, #tpu.memory_space<vmem>>, vector<128x128xbf16>
    %c0_8 = arith.constant 0 : index
    %c0_9 = arith.constant 0 : index
    %10 = vector.load %arg5[%c0_8, %c0_9] : memref<1x128xbf16, #tpu.memory_space<vmem>>, vector<1x128xbf16>
    %cst_10 = arith.constant dense<0.000000e+00> : vector<264x128xf32>
    %11 = tpu.matmul %8, %9, %cst_10 {dimension_numbers = #tpu.dot_dimension_numbers<[1], [0], [0], [1], [0, 0, 1, 1], [], []>} : vector<264x128xbf16>, vector<128x128xbf16>, vector<264x128xf32> -> vector<264x128xf32>
    %12 = arith.truncf %11 : vector<264x128xf32> to vector<264x128xbf16>
    %13 = vector.broadcast %10 : vector<1x128xbf16> to vector<264x128xbf16>
    %14 = arith.addf %12, %13 : vector<264x128xbf16>
    %cst_11 = arith.constant 0.000000e+00 : bf16
    %15 = vector.broadcast %cst_11 : bf16 to vector<264x128xbf16>
    %16 = arith.maximumf %14, %15 : vector<264x128xbf16>
    %c0_12 = arith.constant 0 : index
    %c0_13 = arith.constant 0 : index
    %17 = vector.load %arg6[%c0_12, %c0_13] : memref<128x128xbf16, #tpu.memory_space<vmem>>, vector<128x128xbf16>
    %c0_14 = arith.constant 0 : index
    %c0_15 = arith.constant 0 : index
    %18 = vector.load %arg7[%c0_14, %c0_15] : memref<3x128xf32, #tpu.memory_space<vmem>>, vector<3x128xf32>
    %cst_16 = arith.constant dense<0.000000e+00> : vector<264x128xf32>
    %19 = tpu.matmul %16, %17, %cst_16 {dimension_numbers = #tpu.dot_dimension_numbers<[1], [0], [0], [1], [0, 0, 1, 1], [], []>} : vector<264x128xbf16>, vector<128x128xbf16>, vector<264x128xf32> -> vector<264x128xf32>
    %20 = vector.extract_strided_slice %18 {offsets = [0, 0], sizes = [1, 128], strides = [1, 1]} : vector<3x128xf32> to vector<1x128xf32>
    %21 = vector.broadcast %20 : vector<1x128xf32> to vector<264x128xf32>
    %22 = arith.addf %19, %21 : vector<264x128xf32>
    %cst_17 = arith.constant 0.000000e+00 : f32
    %23 = vector.broadcast %cst_17 : f32 to vector<264x128xf32>
    %24 = arith.maximumf %22, %23 : vector<264x128xf32>
    %25 = vector.extract_strided_slice %18 {offsets = [1, 0], sizes = [1, 128], strides = [1, 1]} : vector<3x128xf32> to vector<1x128xf32>
    %26 = vector.broadcast %25 : vector<1x128xf32> to vector<264x128xf32>
    %27 = arith.mulf %24, %26 : vector<264x128xf32>
    %28 = vector.extract_strided_slice %18 {offsets = [2, 0], sizes = [1, 128], strides = [1, 1]} : vector<3x128xf32> to vector<1x128xf32>
    %29 = vector.broadcast %28 : vector<1x128xf32> to vector<264x128xf32>
    %30 = arith.addf %27, %29 : vector<264x128xf32>
    %c0_18 = arith.constant 0 : index
    %c0_19 = arith.constant 0 : index
    %31 = vector.load %arg8[%c0_18, %c0_19] : memref<264x128xf32, #tpu.memory_space<vmem>>, vector<264x128xf32>
    tpu.vector_store %arg8[%c0_18, %c0_19], %30 {strides = array<i32>} : memref<264x128xf32, #tpu.memory_space<vmem>>, vector<264x128xf32>,
    return
  }
  func.func @transform_0(%arg0: i32) -> (i32, i32) {
    %c0_i32 = arith.constant 0 : i32
    %c0_i32_0 = arith.constant 0 : i32
    return %arg0, %c0_i32 : i32, i32
  }
  func.func @transform_1(%arg0: i32) -> (i32, i32) {
    %c0_i32 = arith.constant 0 : i32
    %c0_i32_0 = arith.constant 0 : i32
    %c0_i32_1 = arith.constant 0 : i32
    return %c0_i32, %c0_i32_0 : i32, i32
  }
  func.func @transform_2(%arg0: i32) -> (i32, i32) {
    %c0_i32 = arith.constant 0 : i32
    %c0_i32_0 = arith.constant 0 : i32
    %c0_i32_1 = arith.constant 0 : i32
    return %c0_i32, %c0_i32_0 : i32, i32
  }
  func.func @transform_3(%arg0: i32) -> (i32, i32) {
    %c0_i32 = arith.constant 0 : i32
    %c0_i32_0 = arith.constant 0 : i32
    %c0_i32_1 = arith.constant 0 : i32
    return %c0_i32, %c0_i32_0 : i32, i32
  }
  func.func @transform_4(%arg0: i32) -> (i32, i32) {
    %c0_i32 = arith.constant 0 : i32
    %c0_i32_0 = arith.constant 0 : i32
    %c0_i32_1 = arith.constant 0 : i32
    return %c0_i32, %c0_i32_0 : i32, i32
  }
  func.func @transform_5(%arg0: i32) -> (i32, i32) {
    %c0_i32 = arith.constant 0 : i32
    %c0_i32_0 = arith.constant 0 : i32
    %c0_i32_1 = arith.constant 0 : i32
    return %c0_i32, %c0_i32_0 : i32, i32
  }
  func.func @transform_6(%arg0: i32) -> (i32, i32) {
    %c0_i32 = arith.constant 0 : i32
    %c0_i32_0 = arith.constant 0 : i32
    %c0_i32_1 = arith.constant 0 : i32
    return %c0_i32, %c0_i32_0 : i32, i32
  }
  func.func @transform_7(%arg0: i32) -> (i32, i32) {
    %c0_i32 = arith.constant 0 : i32
    %c0_i32_0 = arith.constant 0 : i32
    return %arg0, %c0_i32 : i32, i32
  }
}

</mosaic_0001>

<bundles_post_ra>
// kernel: deep_forward_pallas.1
= control target key start
LH: loop header
LB: loop body
LE: loop exit
PB: predicated region body
PF: predicated region fallthrough
CT: control target
= control target key end

     0   :  { %v1551_v0 = vmov 0.0   ;;  %vm1552_vm0 = vmmov 0   ;;  %v413_v34 = vlaneseq  ;;  %v1553_v52 = vmov 0   ;;  %s2161_s1 = inlined_call_operand.vmem [shape: bf16[128,128], index: 1, kind: input, shape index: {}]   ;;  %s2162_s0 = inlined_call_operand.vmem [shape: bf16[264,128], index: 0, kind: input, shape index: {}]   ;;  %s2163_s3 = inlined_call_operand.vmem [shape: bf16[128,128], index: 3, kind: input, shape index: {}]   ;;  %s2164_s2 = inlined_call_operand.vmem [shape: bf16[1,128], index: 2, kind: input, shape index: {}]   ;;  %s2165_s5 = inlined_call_operand.vmem [shape: bf16[128,128], index: 5, kind: input, shape index: {}]   ;;  %s2166_s4 = inlined_call_operand.vmem [shape: bf16[1,128], index: 4, kind: input, shape index: {}]   ;;  %s2167_s6 = inlined_call_operand.vmem [shape: f32[3,128], index: 6, kind: input, shape index: {}]   ;;  %s2168_s7 = inlined_call_operand.vmem [shape: f32[264,128], index: 7, kind: output, shape index: {}]  }
   0x1   :  { %1239 = vmatprep.subr.bf16.mxu0 %v1551_v0  ;;  %v1510_v1 = vld [vmem:[%s2161_s1] sm:$0xff]   ;;  %1255 = vmatprep.mubr.msk.bf16.mxu0 %vm1552_vm0, %v1551_v0  ;;  %v1511_v2 = vld [vmem:[%s2161_s1 + $0x8] sm:$0xff]   ;;  %v1512_v3 = vld [vmem:[%s2161_s1 + $0x10] sm:$0xff]  }
   0x2   :  { %1491 = vmatprep.subr.bf16.mxu1 %v1551_v0  ;;  %1291 = vmatprep.mubr.msk.bf16.mxu1 %vm1552_vm0, %v1551_v0  ;;  %v1513_v4 = vld [vmem:[%s2161_s1 + $0x18] sm:$0xff]   ;;  %v1514_v5 = vld [vmem:[%s2161_s1 + $0x20] sm:$0xff]   ;;  %v1515_v6 = vld [vmem:[%s2161_s1 + $0x28] sm:$0xff]   ;;  %v1756_v35 = vshrl.u32 %v413_v34, 7 }
   0x3   :  { %1240 = vmatpush3.bf16.msra.mxu0 %v1510_v1  ;;  %1499 = vmatpush3.bf16.msra.mxu1 %v1510_v1  ;;  %v1516_v7 = vld [vmem:[%s2161_s1 + $0x30] sm:$0xff]   ;;  %v1517_v8 = vld [vmem:[%s2161_s1 + $0x38] sm:$0xff]   ;;  %v1518_v9 = vld [vmem:[%s2162_s0] sm:$0xff]  }
   0x4   :  { %1241 = vmatprep.subr.bf16.mxu0 %v1551_v0  ;;  %1492 = vmatprep.subr.bf16.mxu1 %v1551_v0  ;;  %v1527_v10 = vld [vmem:[%s2162_s0 + $0x48] sm:$0xff]   ;;  %v1535_v11 = vld [vmem:[%s2163_s3] sm:$0xff]   ;;  %v1528_v14 = vld [vmem:[%s2162_s0 + $0x50] sm:$0xff]   ;;  %v1762_v38 = vsub.s32 0, %v1756_v35 }
   0x5   :  { %v1536_v12 = vld [vmem:[%s2163_s3 + $0x8] sm:$0xff]   ;;  %v1537_v15 = vld [vmem:[%s2163_s3 + $0x10] sm:$0xff]   ;;  %v1538_v16 = vld [vmem:[%s2163_s3 + $0x18] sm:$0xff]  }
   0x6   :  { %v1519_v13 = vld [vmem:[%s2162_s0 + $0x8] sm:$0xff]   ;;  %v1520_v17 = vld [vmem:[%s2162_s0 + $0x10] sm:$0xff]   ;;  %v1529_v18 = vld [vmem:[%s2162_s0 + $0x58] sm:$0xff]  }
   0x7   :  { %1242 = vmatpush3.bf16.msra.mxu0 %v1511_v2  ;;  %1500 = vmatpush3.bf16.msra.mxu1 %v1511_v2  ;;  %v1539_v19 = vld [vmem:[%s2163_s3 + $0x20] sm:$0xff]   ;;  %v1540_v20 = vld [vmem:[%s2163_s3 + $0x28] sm:$0xff]   ;;  %v1521_v21 = vld [vmem:[%s2162_s0 + $0x18] sm:$0xff]  }
   0x8   :  { %1243 = vmatprep.subr.bf16.mxu0 %v1551_v0  ;;  %1493 = vmatprep.subr.bf16.mxu1 %v1551_v0  ;;  %v1530_v22 = vld [vmem:[%s2162_s0 + $0x60] sm:$0xff]   ;;  %v1541_v23 = vld [vmem:[%s2163_s3 + $0x30] sm:$0xff]   ;;  %v1531_v25 = vld [vmem:[%s2162_s0 + $0x68] sm:$0xff]  }
   0x9   :  { %v1522_v24 = vld [vmem:[%s2162_s0 + $0x20] sm:$0xff]   ;;  %v1523_v26 = vld [vmem:[%s2162_s0 + $0x28] sm:$0xff]   ;;  %v1532_v27 = vld [vmem:[%s2162_s0 + $0x70] sm:$0xff]  }
   0xa   :  { %v1524_v28 = vld [vmem:[%s2162_s0 + $0x30] sm:$0xff]   ;;  %v1533_v29 = vld [vmem:[%s2162_s0 + $0x78] sm:$0xff]   ;;  %v1534_v31 = vld [vmem:[%s2162_s0 + $0x80] ss:$0 sps:$4 sm:$0xff]  }
   0xb   :  { %1244 = vmatpush3.bf16.msra.mxu0 %v1512_v3  ;;  %1501 = vmatpush3.bf16.msra.mxu1 %v1512_v3  ;;  %v1525_v30 = vld [vmem:[%s2162_s0 + $0x38] sm:$0xff]   ;;  %v1526_v32 = vld [vmem:[%s2162_s0 + $0x40] sm:$0xff]   ;;  %v1548_v34 = vld [vmem:[%s2165_s5 + $0x28] sm:$0xff]  }
   0xc   :  { %1245 = vmatprep.subr.bf16.mxu0 %v1551_v0  ;;  %1494 = vmatprep.subr.bf16.mxu1 %v1551_v0  ;;  %v1542_v33 = vld [vmem:[%s2163_s3 + $0x38] sm:$0xff]   ;;  %v76_v36 = vld [vmem:[%s2164_s2] sm:$0x1] }
   0xd   :  { %v411_v37 = vpack.i.b16 %v76_v36, %v76_v36  ;;  %v1543_v1 = vld [vmem:[%s2165_s5] sm:$0xff]  }
   0xf   :  { %1246 = vmatpush3.bf16.msra.mxu0 %v1513_v4  ;;  %1502 = vmatpush3.bf16.msra.mxu1 %v1513_v4  ;;  %v1765_v42 = vrot.slane %v411_v37, %v1762_v38  ;;  %v1544_v4 = vld [vmem:[%s2165_s5 + $0x8] sm:$0xff]  }
  0x10   :  { %1247 = vmatprep.subr.bf16.mxu0 %v1551_v0  ;;  %1495 = vmatprep.subr.bf16.mxu1 %v1551_v0 }
  0x13   :  { %1248 = vmatpush3.bf16.msra.mxu0 %v1514_v5  ;;  %1503 = vmatpush3.bf16.msra.mxu1 %v1514_v5 }
  0x14   :  { %1249 = vmatprep.subr.bf16.mxu0 %v1551_v0  ;;  %1496 = vmatprep.subr.bf16.mxu1 %v1551_v0 }
  0x17   :  { %1250 = vmatpush3.bf16.msra.mxu0 %v1515_v6  ;;  %1504 = vmatpush3.bf16.msra.mxu1 %v1515_v6 }
  0x18   :  { %1251 = vmatprep.subr.bf16.mxu0 %v1551_v0  ;;  %1497 = vmatprep.subr.bf16.mxu1 %v1551_v0 }
  0x1b   :  { %1252 = vmatpush3.bf16.msra.mxu0 %v1516_v7  ;;  %1505 = vmatpush3.bf16.msra.mxu1 %v1516_v7 }
  0x1c   :  { %1253 = vmatprep.subr.bf16.mxu0 %v1551_v0  ;;  %1498 = vmatprep.subr.bf16.mxu1 %v1551_v0 }
  0x1f   :  { %1254 = vmatpush3.bf16.msra.mxu0 %v1517_v8  ;;  %1506 = vmatpush3.bf16.msra.mxu1 %v1517_v8  ;;  %v1545_v8 = vld [vmem:[%s2165_s5 + $0x10] sm:$0xff]  }
  0x20   :  { %1323 = vmatprep.subr.bf16.mxu1 %v1551_v0  ;;  %1407 = vmatprep.subr.bf16.mxu0 %v1551_v0 }
  0x22   :  { %1256 = vmatmul.mubr.bf16.vlgmr.msra.gmra.mrb[0].mxu0 %v1518_v9  ;;  %1292 = vmatmul.mubr.bf16.vlgmr.msra.gmra.mrb[0].mxu1 %v1527_v10 }
  0x23   :  { %1259 = vmatprep.mubr.msk.bf16.mxu0 %vm1552_vm0, %v1551_v0  ;;  %1295 = vmatprep.mubr.msk.bf16.mxu1 %vm1552_vm0, %v1551_v0 }
  0x24   :  { %1324 = vmatpush3.bf16.msra.mxu1 %v1535_v11  ;;  %1408 = vmatpush3.bf16.msra.mxu0 %v1543_v1 }
  0x25   :  { %1325 = vmatprep.subr.bf16.mxu1 %v1551_v0  ;;  %1409 = vmatprep.subr.bf16.mxu0 %v1551_v0 }
  0x28   :  { %1326 = vmatpush3.bf16.msra.mxu1 %v1536_v12  ;;  %1410 = vmatpush3.bf16.msra.mxu0 %v1544_v4 }
  0x29   :  { %1327 = vmatprep.subr.bf16.mxu1 %v1551_v0  ;;  %1411 = vmatprep.subr.bf16.mxu0 %v1551_v0 }
  0x2a   :  { %1260 = vmatmul.mubr.bf16.gmra.mrb[4].mxu0 %v1519_v13  ;;  %1296 = vmatmul.mubr.bf16.gmra.mrb[4].mxu1 %v1528_v14 }
  0x2b   :  { %1263 = vmatprep.mubr.msk.bf16.mxu0 %vm1552_vm0, %v1551_v0  ;;  %1299 = vmatprep.mubr.msk.bf16.mxu1 %vm1552_vm0, %v1551_v0 }
  0x2c   :  { %1328 = vmatpush3.bf16.msra.mxu1 %v1537_v15  ;;  %1412 = vmatpush3.bf16.msra.mxu0 %v1545_v8 }
  0x2d   :  { %1329 = vmatprep.subr.bf16.mxu1 %v1551_v0  ;;  %1413 = vmatprep.subr.bf16.mxu0 %v1551_v0 }
  0x30   :  { %1330 = vmatpush3.bf16.msra.mxu1 %v1538_v16 }
  0x31   :  { %1331 = vmatprep.subr.bf16.mxu1 %v1551_v0 }
  0x32   :  { %1264 = vmatmul.mubr.bf16.gmra.mrb[8].mxu0 %v1520_v17  ;;  %1300 = vmatmul.mubr.bf16.gmra.mrb[8].mxu1 %v1529_v18 }
  0x33   :  { %1267 = vmatprep.mubr.msk.bf16.mxu0 %vm1552_vm0, %v1551_v0  ;;  %1303 = vmatprep.mubr.msk.bf16.mxu1 %vm1552_vm0, %v1551_v0 }
  0x34   :  { %1332 = vmatpush3.bf16.msra.mxu1 %v1539_v19  ;;  %v1546_v19 = vld [vmem:[%s2165_s5 + $0x18] sm:$0xff]  }
  0x35   :  { %1333 = vmatprep.subr.bf16.mxu1 %v1551_v0  ;;  %1414 = vmatpush3.bf16.msra.mxu0 %v1546_v19 }
  0x36   :  { %1415 = vmatprep.subr.bf16.mxu0 %v1551_v0 }
  0x38   :  { %1334 = vmatpush3.bf16.msra.mxu1 %v1540_v20 }
  0x39   :  { %1335 = vmatprep.subr.bf16.mxu1 %v1551_v0 }
  0x3a   :  { %1268 = vmatmul.mubr.bf16.gmra.mrb[12].mxu0 %v1521_v21  ;;  %1304 = vmatmul.mubr.bf16.gmra.mrb[12].mxu1 %v1530_v22 }
  0x3b   :  { %1271 = vmatprep.mubr.msk.bf16.mxu0 %vm1552_vm0, %v1551_v0  ;;  %1307 = vmatprep.mubr.msk.bf16.mxu1 %vm1552_vm0, %v1551_v0 }
  0x3c   :  { %1336 = vmatpush3.bf16.msra.mxu1 %v1541_v23 }
  0x3d   :  { %1337 = vmatprep.subr.bf16.mxu1 %v1551_v0 }
  0x40   :  { %1338 = vmatpush3.bf16.msra.mxu1 %v1542_v33 }
  0x42   :  { %1272 = vmatmul.mubr.bf16.gmra.mrb[16].mxu0 %v1522_v24  ;;  %1308 = vmatmul.mubr.bf16.gmra.mrb[16].mxu1 %v1531_v25  ;;  %v1547_v25 = vld [vmem:[%s2165_s5 + $0x20] sm:$0xff]  }
  0x43   :  { %1275 = vmatprep.mubr.msk.bf16.mxu0 %vm1552_vm0, %v1551_v0  ;;  %1311 = vmatprep.mubr.msk.bf16.mxu1 %vm1552_vm0, %v1551_v0 }
  0x44   :  { %1416 = vmatpush3.bf16.msra.mxu0 %v1547_v25 }
  0x45   :  { %1417 = vmatprep.subr.bf16.mxu0 %v1551_v0 }
  0x48   :  { %1418 = vmatpush3.bf16.msra.mxu0 %v1548_v34 }
  0x49   :  { %1419 = vmatprep.subr.bf16.mxu0 %v1551_v0 }
  0x4a   :  { %1276 = vmatmul.mubr.bf16.gmra.mrb[20].mxu0 %v1523_v26  ;;  %1312 = vmatmul.mubr.bf16.gmra.mrb[20].mxu1 %v1532_v27 }
  0x4b   :  { %1279 = vmatprep.mubr.msk.bf16.mxu0 %vm1552_vm0, %v1551_v0  ;;  %1315 = vmatprep.mubr.msk.bf16.mxu1 %vm1552_vm0, %v1551_v0 }
  0x52   :  { %1280 = vmatmul.mubr.bf16.gmra.mrb[24].mxu0 %v1524_v28  ;;  %1316 = vmatmul.mubr.bf16.gmra.mrb[24].mxu1 %v1533_v29 }
  0x53   :  { %1283 = vmatprep.mubr.msk.bf16.mxu0 %vm1552_vm0, %v1551_v0  ;;  %1319 = vmatprep.mubr.msk.bf16.mxu1 %vm1552_vm0, %v1551_v0 }
  0x5a   :  { %1284 = vmatmul.mubr.bf16.gmra.mrb[28].mxu0 %v1525_v30  ;;  %1320 = vmatmul.mubr.bf16.gmra.mrb[28].mxu1 %v1534_v31 }
  0x5b   :  { %1287 = vmatprep.mubr.msk.bf16.mxu0 %vm1552_vm0, %v1551_v0  ;;  %1339 = vmatprep.mubr.msk.bf16.mxu1 %vm1552_vm0, %v1551_v0 }
  0x62   :  { %1288 = vmatmul.mubr.bf16.gmra.mrb[32].mxu0 %v1526_v32 }
  0x63   :  { %1423 = vmatprep.mubr.msk.bf16.mxu0 %vm1552_vm0, %v1551_v0 }
  0xf5   :  { %v259_v39 = vpop.f32.mrb[0].mxu0  ;;  %v331_v40 = vpop.f32.mrb[0].mxu1 }
  0xf6   :  { %v1257_v41 = vpop.f32.mrb[1].mxu0  ;;  %v1293_v43 = vpop.f32.mrb[1].mxu1 }
  0xf7   :  { %v262_v44 = vpop.f32.mrb[2].mxu0  ;;  %v334_v45 = vpop.f32.mrb[2].mxu1  ;;  %v1549_v43 = vld [vmem:[%s2165_s5 + $0x30] sm:$0xff]  }
  0xf8   :  { %v393_v46 = vpack.c.bf16 %v262_v44, %v259_v39  ;;  %v1258_v47 = vpop.f32.mrb[3].mxu0  ;;  %v402_v48 = vpack.c.bf16 %v334_v45, %v331_v40  ;;  %v1294_v49 = vpop.f32.mrb[3].mxu1  ;;  %1420 = vmatpush3.bf16.msra.mxu0 %v1549_v43 }
  0xf9   :  { %1421 = vmatprep.subr.bf16.mxu0 %v1551_v0 }
  0xfa   :  { %v417_v50 = vadd.bf16 %v1765_v42, %v393_v46  ;;  %v1769_v51 = vadd.bf16 %v1765_v42, %v402_v48 }
  0xfc   :  { %v434_v53 = vmax.bf16 %v1553_v52, %v417_v50 }
  0xfd   :  { %v267_v54 = vpop.f32.mrb[4].mxu0  ;;  %v339_v55 = vpop.f32.mrb[4].mxu1 }
  0xfe   :  { %v1261_v56 = vpop.f32.mrb[5].mxu0  ;;  %1340 = vmatmul.mubr.bf16.vlgmr.msra.gmra.mrb[32].mxu1 %v434_v53  ;;  %v1297_v57 = vpop.f32.mrb[5].mxu1 }
  0xff   :  { %v270_v58 = vpop.f32.mrb[6].mxu0  ;;  %1343 = vmatprep.mubr.msk.bf16.mxu1 %vm1552_vm0, %v1551_v0  ;;  %v342_v59 = vpop.f32.mrb[6].mxu1 }
 0x100   :  { %v394_v60 = vpack.c.bf16 %v270_v58, %v267_v54  ;;  %v1262_v61 = vpop.f32.mrb[7].mxu0  ;;  %v403_v62 = vpack.c.bf16 %v342_v59, %v339_v55  ;;  %v1298_v63 = vpop.f32.mrb[7].mxu1 }
 0x102   :  { %v418_v2 = vadd.bf16 %v1765_v42, %v394_v60  ;;  %v1779_v3 = vadd.bf16 %v1765_v42, %v403_v62 }
 0x104   :  { %v435_v5 = vmax.bf16 %v1553_v52, %v418_v2 }
 0x105   :  { %v275_v6 = vpop.f32.mrb[8].mxu0  ;;  %v347_v7 = vpop.f32.mrb[8].mxu1 }
 0x106   :  { %v1265_v9 = vpop.f32.mrb[9].mxu0  ;;  %1344 = vmatmul.mubr.bf16.gmra.mrb[36].mxu1 %v435_v5  ;;  %v1301_v10 = vpop.f32.mrb[9].mxu1 }
 0x107   :  { %v278_v11 = vpop.f32.mrb[10].mxu0  ;;  %1347 = vmatprep.mubr.msk.bf16.mxu1 %vm1552_vm0, %v1551_v0  ;;  %v350_v12 = vpop.f32.mrb[10].mxu1 }
 0x108   :  { %v395_v13 = vpack.c.bf16 %v278_v11, %v275_v6  ;;  %v1266_v14 = vpop.f32.mrb[11].mxu0  ;;  %v404_v15 = vpack.c.bf16 %v350_v12, %v347_v7  ;;  %v1302_v16 = vpop.f32.mrb[11].mxu1 }
 0x10a   :  { %v419_v17 = vadd.bf16 %v1765_v42, %v395_v13  ;;  %v1794_v18 = vadd.bf16 %v1765_v42, %v404_v15 }
 0x10c   :  { %v436_v20 = vmax.bf16 %v1553_v52, %v419_v17 }
 0x10d   :  { %v283_v21 = vpop.f32.mrb[12].mxu0  ;;  %v355_v22 = vpop.f32.mrb[12].mxu1 }
 0x10e   :  { %v1269_v23 = vpop.f32.mrb[13].mxu0  ;;  %1348 = vmatmul.mubr.bf16.gmra.mrb[40].mxu1 %v436_v20  ;;  %v1305_v24 = vpop.f32.mrb[13].mxu1 }
 0x10f   :  { %v286_v26 = vpop.f32.mrb[14].mxu0  ;;  %1351 = vmatprep.mubr.msk.bf16.mxu1 %vm1552_vm0, %v1551_v0  ;;  %v358_v27 = vpop.f32.mrb[14].mxu1 }
 0x110   :  { %v396_v28 = vpack.c.bf16 %v286_v26, %v283_v21  ;;  %v1270_v29 = vpop.f32.mrb[15].mxu0  ;;  %v405_v30 = vpack.c.bf16 %v358_v27, %v355_v22  ;;  %v1306_v31 = vpop.f32.mrb[15].mxu1 }
 0x112   :  { %v420_v32 = vadd.bf16 %v1765_v42, %v396_v28  ;;  %v1809_v33 = vadd.bf16 %v1765_v42, %v405_v30 }
 0x114   :  { %v437_v36 = vmax.bf16 %v1553_v52, %v420_v32 }
 0x115   :  { %v291_v37 = vpop.f32.mrb[16].mxu0  ;;  %v363_v39 = vpop.f32.mrb[16].mxu1 }
 0x116   :  { %v1273_v40 = vpop.f32.mrb[17].mxu0  ;;  %1352 = vmatmul.mubr.bf16.gmra.mrb[44].mxu1 %v437_v36  ;;  %v1309_v41 = vpop.f32.mrb[17].mxu1 }
 0x117   :  { %v294_v44 = vpop.f32.mrb[18].mxu0  ;;  %1355 = vmatprep.mubr.msk.bf16.mxu1 %vm1552_vm0, %v1551_v0  ;;  %v366_v45 = vpop.f32.mrb[18].mxu1 }
 0x118   :  { %v397_v46 = vpack.c.bf16 %v294_v44, %v291_v37  ;;  %v1274_v47 = vpop.f32.mrb[19].mxu0  ;;  %v406_v48 = vpack.c.bf16 %v366_v45, %v363_v39  ;;  %v1310_v49 = vpop.f32.mrb[19].mxu1  ;;  %v443_v44 = vmax.bf16 %v1553_v52, %v1769_v51  ;;  %v444_v45 = vmax.bf16 %v1553_v52, %v1779_v3 }
 0x119   :  { %v446_v51 = vmax.bf16 %v1553_v52, %v1809_v33 }
 0x11a   :  { %v421_v50 = vadd.bf16 %v1765_v42, %v397_v46  ;;  %v1824_v53 = vadd.bf16 %v1765_v42, %v406_v48  ;;  %v445_v46 = vmax.bf16 %v1553_v52, %v1794_v18  ;;  %v467_v48 = vld [vmem:[%s2166_s4] sm:$0x1] }
 0x11b   :  { %v702_v49 = vpack.i.b16 %v467_v48, %v467_v48 }
 0x11c   :  { %v438_v54 = vmax.bf16 %v1553_v52, %v421_v50  ;;  %v447_v3 = vmax.bf16 %v1553_v52, %v1824_v53 }
 0x11d   :  { %v299_v55 = vpop.f32.mrb[20].mxu0  ;;  %v371_v56 = vpop.f32.mrb[20].mxu1 }
 0x11e   :  { %v1277_v57 = vpop.f32.mrb[21].mxu0  ;;  %1356 = vmatmul.mubr.bf16.gmra.mrb[48].mxu1 %v438_v54  ;;  %v1313_v58 = vpop.f32.mrb[21].mxu1  ;;  %v1883_v54 = vrot.slane %v702_v49, %v1762_v38 }
 0x11f   :  { %v302_v59 = vpop.f32.mrb[22].mxu0  ;;  %1359 = vmatprep.mubr.msk.bf16.mxu1 %vm1552_vm0, %v1551_v0  ;;  %v374_v60 = vpop.f32.mrb[22].mxu1 }
 0x120   :  { %v398_v61 = vpack.c.bf16 %v302_v59, %v299_v55  ;;  %v1278_v62 = vpop.f32.mrb[23].mxu0  ;;  %v407_v63 = vpack.c.bf16 %v374_v60, %v371_v56  ;;  %v1314_v1 = vpop.f32.mrb[23].mxu1 }
 0x122   :  { %v422_v2 = vadd.bf16 %v1765_v42, %v398_v61  ;;  %v431_v4 = vadd.bf16 %v1765_v42, %v407_v63 }
 0x124   :  { %v439_v5 = vmax.bf16 %v1553_v52, %v422_v2  ;;  %v448_v18 = vmax.bf16 %v1553_v52, %v431_v4 }
 0x125   :  { %v307_v6 = vpop.f32.mrb[24].mxu0  ;;  %v379_v7 = vpop.f32.mrb[24].mxu1 }
 0x126   :  { %v1281_v8 = vpop.f32.mrb[25].mxu0  ;;  %1360 = vmatmul.mubr.bf16.gmra.mrb[52].mxu1 %v439_v5  ;;  %v1317_v9 = vpop.f32.mrb[25].mxu1 }
 0x127   :  { %v310_v10 = vpop.f32.mrb[26].mxu0  ;;  %1363 = vmatprep.mubr.msk.bf16.mxu1 %vm1552_vm0, %v1551_v0  ;;  %v382_v11 = vpop.f32.mrb[26].mxu1 }
 0x128   :  { %v399_v12 = vpack.c.bf16 %v310_v10, %v307_v6  ;;  %v1282_v13 = vpop.f32.mrb[27].mxu0  ;;  %v408_v14 = vpack.c.bf16 %v382_v11, %v379_v7  ;;  %v1318_v15 = vpop.f32.mrb[27].mxu1 }
 0x12a   :  { %v423_v16 = vadd.bf16 %v1765_v42, %v399_v12  ;;  %v432_v17 = vadd.bf16 %v1765_v42, %v408_v14 }
 0x12c   :  { %v440_v19 = vmax.bf16 %v1553_v52, %v423_v16  ;;  %v449_v47 = vmax.bf16 %v1553_v52, %v432_v17 }
 0x12d   :  { %v315_v20 = vpop.f32.mrb[28].mxu0  ;;  %v387_v21 = vpop.f32.mrb[28].mxu1 }
 0x12e   :  { %v1285_v22 = vpop.f32.mrb[29].mxu0  ;;  %1364 = vmatmul.mubr.bf16.gmra.mrb[56].mxu1 %v440_v19  ;;  %v409_v23 = vpack.c.bf16 %v387_v21, %v387_v21  ;;  %v1321_v24 = vpop.f32.mrb[29].mxu1 }
 0x12f   :  { %v318_v25 = vpop.f32.mrb[30].mxu0  ;;  %1367 = vmatprep.mubr.msk.bf16.mxu1 %vm1552_vm0, %v1551_v0  ;;  %v390_v26 = vpop.f32.mrb[30].mxu1 }
 0x130   :  { %v400_v27 = vpack.c.bf16 %v318_v25, %v315_v20  ;;  %v1286_v28 = vpop.f32.mrb[31].mxu0  ;;  %v433_v29 = vadd.bf16 %v1765_v42, %v409_v23  ;;  %v1322_v30 = vpop.f32.mrb[31].mxu1 }
 0x132   :  { %v424_v31 = vadd.bf16 %v1765_v42, %v400_v27  ;;  %v450_v33 = vmax.bf16 %v1553_v52, %v433_v29 }
 0x134   :  { %v441_v32 = vmax.bf16 %v1553_v52, %v424_v31 }
 0x135   :  { %v323_v34 = vpop.f32.mrb[32].mxu0 }
 0x136   :  { %v1289_v36 = vpop.f32.mrb[33].mxu0  ;;  %1368 = vmatmul.mubr.bf16.gmra.mrb[60].mxu1 %v441_v32 }
 0x137   :  { %v326_v37 = vpop.f32.mrb[34].mxu0  ;;  %1371 = vmatprep.mubr.msk.bf16.mxu1 %vm1552_vm0, %v1551_v0 }
 0x138   :  { %v401_v39 = vpack.c.bf16 %v326_v37, %v323_v34  ;;  %v1290_v40 = vpop.f32.mrb[35].mxu0 }
 0x13a   :  { %v425_v41 = vadd.bf16 %v1765_v42, %v401_v39  ;;  %v1550_v42 = vld [vmem:[%s2165_s5 + $0x38] sm:$0xff]  }
 0x13b   :  { %1422 = vmatpush3.bf16.msra.mxu0 %v1550_v42 }
 0x13c   :  { %v442_v43 = vmax.bf16 %v1553_v52, %v425_v41 }
 0x13e   :  { %1372 = vmatmul.mubr.bf16.gmra.mrb[64].mxu1 %v442_v43 }
 0x13f   :  { %1375 = vmatprep.mubr.msk.bf16.mxu1 %vm1552_vm0, %v1551_v0 }
 0x146   :  { %1376 = vmatmul.mubr.bf16.gmra.mrb[68].mxu1 %v443_v44 }
 0x147   :  { %1379 = vmatprep.mubr.msk.bf16.mxu1 %vm1552_vm0, %v1551_v0 }
 0x14e   :  { %1380 = vmatmul.mubr.bf16.gmra.mrb[72].mxu1 %v444_v45 }
 0x14f   :  { %1383 = vmatprep.mubr.msk.bf16.mxu1 %vm1552_vm0, %v1551_v0 }
 0x156   :  { %1384 = vmatmul.mubr.bf16.gmra.mrb[76].mxu1 %v445_v46 }
 0x157   :  { %1387 = vmatprep.mubr.msk.bf16.mxu1 %vm1552_vm0, %v1551_v0 }
 0x15e   :  { %1388 = vmatmul.mubr.bf16.gmra.mrb[80].mxu1 %v446_v51 }
 0x15f   :  { %1391 = vmatprep.mubr.msk.bf16.mxu1 %vm1552_vm0, %v1551_v0 }
 0x166   :  { %1392 = vmatmul.mubr.bf16.gmra.mrb[84].mxu1 %v447_v3 }
 0x167   :  { %1395 = vmatprep.mubr.msk.bf16.mxu1 %vm1552_vm0, %v1551_v0 }
 0x16e   :  { %1396 = vmatmul.mubr.bf16.gmra.mrb[88].mxu1 %v448_v18 }
 0x16f   :  { %1399 = vmatprep.mubr.msk.bf16.mxu1 %vm1552_vm0, %v1551_v0 }
 0x176   :  { %1400 = vmatmul.mubr.bf16.gmra.mrb[92].mxu1 %v449_v47 }
 0x177   :  { %1403 = vmatprep.mubr.msk.bf16.mxu1 %vm1552_vm0, %v1551_v0 }
 0x17e   :  { %1404 = vmatmul.mubr.bf16.gmra.mrb[96].mxu1 %v450_v33 }
 0x1d1   :  { %v550_v50 = vpop.f32.mrb[32].mxu1 }
 0x1d2   :  { %v1341_v53 = vpop.f32.mrb[33].mxu1 }
 0x1d3   :  { %v553_v55 = vpop.f32.mrb[34].mxu1 }
 0x1d4   :  { %v684_v56 = vpack.c.bf16 %v553_v55, %v550_v50  ;;  %v1342_v57 = vpop.f32.mrb[35].mxu1 }
 0x1d6   :  { %v708_v58 = vadd.bf16 %v1883_v54, %v684_v56 }
 0x1d8   :  { %v725_v59 = vmax.bf16 %v1553_v52, %v708_v58 }
 0x1d9   :  { %v558_v60 = vpop.f32.mrb[36].mxu1 }
 0x1da   :  { %v1345_v61 = vpop.f32.mrb[37].mxu1  ;;  %1424 = vmatmul.mubr.bf16.vlgmr.msra.gmra.mrb[36].mxu0 %v725_v59 }
 0x1db   :  { %v561_v62 = vpop.f32.mrb[38].mxu1  ;;  %1427 = vmatprep.mubr.msk.bf16.mxu0 %vm1552_vm0, %v1551_v0 }
 0x1dc   :  { %v685_v63 = vpack.c.bf16 %v561_v62, %v558_v60  ;;  %v1346_v1 = vpop.f32.mrb[39].mxu1 }
 0x1de   :  { %v709_v2 = vadd.bf16 %v1883_v54, %v685_v63 }
 0x1e0   :  { %v726_v4 = vmax.bf16 %v1553_v52, %v709_v2 }
 0x1e1   :  { %v566_v5 = vpop.f32.mrb[40].mxu1 }
 0x1e2   :  { %v1349_v6 = vpop.f32.mrb[41].mxu1  ;;  %1428 = vmatmul.mubr.bf16.gmra.mrb[40].mxu0 %v726_v4 }
 0x1e3   :  { %v569_v7 = vpop.f32.mrb[42].mxu1  ;;  %1431 = vmatprep.mubr.msk.bf16.mxu0 %vm1552_vm0, %v1551_v0 }
 0x1e4   :  { %v686_v8 = vpack.c.bf16 %v569_v7, %v566_v5  ;;  %v1350_v9 = vpop.f32.mrb[43].mxu1 }
 0x1e6   :  { %v710_v10 = vadd.bf16 %v1883_v54, %v686_v8 }
 0x1e8   :  { %v727_v11 = vmax.bf16 %v1553_v52, %v710_v10 }
 0x1e9   :  { %v574_v12 = vpop.f32.mrb[44].mxu1 }
 0x1ea   :  { %v1353_v13 = vpop.f32.mrb[45].mxu1  ;;  %1432 = vmatmul.mubr.bf16.gmra.mrb[44].mxu0 %v727_v11 }
 0x1eb   :  { %v577_v14 = vpop.f32.mrb[46].mxu1  ;;  %1435 = vmatprep.mubr.msk.bf16.mxu0 %vm1552_vm0, %v1551_v0 }
 0x1ec   :  { %v687_v15 = vpack.c.bf16 %v577_v14, %v574_v12  ;;  %v1354_v16 = vpop.f32.mrb[47].mxu1 }
 0x1ee   :  { %v711_v17 = vadd.bf16 %v1883_v54, %v687_v15 }
 0x1f0   :  { %v728_v19 = vmax.bf16 %v1553_v52, %v711_v17 }
 0x1f1   :  { %v582_v20 = vpop.f32.mrb[48].mxu1 }
 0x1f2   :  { %v1357_v21 = vpop.f32.mrb[49].mxu1  ;;  %1436 = vmatmul.mubr.bf16.gmra.mrb[48].mxu0 %v728_v19 }
 0x1f3   :  { %v585_v22 = vpop.f32.mrb[50].mxu1  ;;  %1439 = vmatprep.mubr.msk.bf16.mxu0 %vm1552_vm0, %v1551_v0 }
 0x1f4   :  { %v688_v23 = vpack.c.bf16 %v585_v22, %v582_v20  ;;  %v1358_v24 = vpop.f32.mrb[51].mxu1 }
 0x1f6   :  { %v712_v25 = vadd.bf16 %v1883_v54, %v688_v23 }
 0x1f8   :  { %v729_v26 = vmax.bf16 %v1553_v52, %v712_v25 }
 0x1f9   :  { %v590_v27 = vpop.f32.mrb[52].mxu1 }
 0x1fa   :  { %v1361_v28 = vpop.f32.mrb[53].mxu1  ;;  %1440 = vmatmul.mubr.bf16.gmra.mrb[52].mxu0 %v729_v26 }
 0x1fb   :  { %v593_v29 = vpop.f32.mrb[54].mxu1  ;;  %1443 = vmatprep.mubr.msk.bf16.mxu0 %vm1552_vm0, %v1551_v0 }
 0x1fc   :  { %v689_v30 = vpack.c.bf16 %v593_v29, %v590_v27  ;;  %v1362_v31 = vpop.f32.mrb[55].mxu1 }
 0x1fe   :  { %v713_v32 = vadd.bf16 %v1883_v54, %v689_v30 }
 0x200   :  { %v730_v34 = vmax.bf16 %v1553_v52, %v713_v32 }
 0x201   :  { %v598_v36 = vpop.f32.mrb[56].mxu1 }
 0x202   :  { %v1365_v37 = vpop.f32.mrb[57].mxu1  ;;  %1444 = vmatmul.mubr.bf16.gmra.mrb[56].mxu0 %v730_v34 }
 0x203   :  { %v601_v39 = vpop.f32.mrb[58].mxu1  ;;  %1447 = vmatprep.mubr.msk.bf16.mxu0 %vm1552_vm0, %v1551_v0 }
 0x204   :  { %v690_v40 = vpack.c.bf16 %v601_v39, %v598_v36  ;;  %v1366_v41 = vpop.f32.mrb[59].mxu1 }
 0x206   :  { %v714_v43 = vadd.bf16 %v1883_v54, %v690_v40 }
 0x208   :  { %v731_v44 = vmax.bf16 %v1553_v52, %v714_v43 }
 0x209   :  { %v606_v45 = vpop.f32.mrb[60].mxu1 }
 0x20a   :  { %v1369_v42 = vpop.f32.mrb[61].mxu1  ;;  %1448 = vmatmul.mubr.bf16.gmra.mrb[60].mxu0 %v731_v44 }
 0x20b   :  { %v609_v46 = vpop.f32.mrb[62].mxu1  ;;  %1451 = vmatprep.mubr.msk.bf16.mxu0 %vm1552_vm0, %v1551_v0 }
 0x20c   :  { %v691_v51 = vpack.c.bf16 %v609_v46, %v606_v45  ;;  %v1370_v3 = vpop.f32.mrb[63].mxu1 }
 0x20e   :  { %v715_v18 = vadd.bf16 %v1883_v54, %v691_v51 }
 0x210   :  { %v732_v47 = vmax.bf16 %v1553_v52, %v715_v18 }
 0x211   :  { %v614_v33 = vpop.f32.mrb[64].mxu1 }
 0x212   :  { %v1373_v48 = vpop.f32.mrb[65].mxu1  ;;  %1452 = vmatmul.mubr.bf16.gmra.mrb[64].mxu0 %v732_v47 }
 0x213   :  { %v617_v49 = vpop.f32.mrb[66].mxu1  ;;  %1455 = vmatprep.mubr.msk.bf16.mxu0 %vm1552_vm0, %v1551_v0 }
 0x214   :  { %v692_v50 = vpack.c.bf16 %v617_v49, %v614_v33  ;;  %v1374_v53 = vpop.f32.mrb[67].mxu1 }
 0x215   :  { %v758_v53 = vld [vmem:[%s2167_s6] sm:$0x7] }
 0x216   :  { %v716_v55 = vadd.bf16 %v1883_v54, %v692_v50 }
 0x218   :  { %v733_v56 = vmax.bf16 %v1553_v52, %v716_v55  ;;  %v1955_v55 = vrot.slane %v758_v53, %v1762_v38 }
 0x219   :  { %v622_v57 = vpop.f32.mrb[68].mxu1 }
 0x21a   :  { %v1377_v58 = vpop.f32.mrb[69].mxu1  ;;  %1456 = vmatmul.mubr.bf16.gmra.mrb[68].mxu0 %v733_v56  ;;  %v1014_v56 = vsub.s32 1, %v1756_v35 }
 0x21b   :  { %v625_v59 = vpop.f32.mrb[70].mxu1  ;;  %1459 = vmatprep.mubr.msk.bf16.mxu0 %vm1552_vm0, %v1551_v0 }
 0x21c   :  { %v693_v60 = vpack.c.bf16 %v625_v59, %v622_v57  ;;  %v1378_v61 = vpop.f32.mrb[71].mxu1  ;;  %v1051_v57 = vsub.s32 2, %v1756_v35  ;;  %v1960_v59 = vrot.slane %v758_v53, %v1014_v56 }
 0x21e   :  { %v717_v62 = vadd.bf16 %v1883_v54, %v693_v60  ;;  %v1962_v61 = vrot.slane %v758_v53, %v1051_v57 }
 0x220   :  { %v734_v63 = vmax.bf16 %v1553_v52, %v717_v62 }
 0x221   :  { %v630_v1 = vpop.f32.mrb[72].mxu1 }
 0x222   :  { %v1381_v2 = vpop.f32.mrb[73].mxu1  ;;  %1460 = vmatmul.mubr.bf16.gmra.mrb[72].mxu0 %v734_v63 }
 0x223   :  { %v633_v4 = vpop.f32.mrb[74].mxu1  ;;  %1463 = vmatprep.mubr.msk.bf16.mxu0 %vm1552_vm0, %v1551_v0 }
 0x224   :  { %v694_v5 = vpack.c.bf16 %v633_v4, %v630_v1  ;;  %v1382_v6 = vpop.f32.mrb[75].mxu1 }
 0x226   :  { %v718_v7 = vadd.bf16 %v1883_v54, %v694_v5 }
 0x228   :  { %v735_v8 = vmax.bf16 %v1553_v52, %v718_v7 }
 0x229   :  { %v638_v9 = vpop.f32.mrb[76].mxu1 }
 0x22a   :  { %v1385_v10 = vpop.f32.mrb[77].mxu1  ;;  %1464 = vmatmul.mubr.bf16.gmra.mrb[76].mxu0 %v735_v8 }
 0x22b   :  { %v641_v11 = vpop.f32.mrb[78].mxu1  ;;  %1467 = vmatprep.mubr.msk.bf16.mxu0 %vm1552_vm0, %v1551_v0 }
 0x22c   :  { %v695_v12 = vpack.c.bf16 %v641_v11, %v638_v9  ;;  %v1386_v13 = vpop.f32.mrb[79].mxu1 }
 0x22e   :  { %v719_v14 = vadd.bf16 %v1883_v54, %v695_v12 }
 0x230   :  { %v736_v15 = vmax.bf16 %v1553_v52, %v719_v14 }
 0x231   :  { %v646_v16 = vpop.f32.mrb[80].mxu1 }
 0x232   :  { %v1389_v17 = vpop.f32.mrb[81].mxu1  ;;  %1468 = vmatmul.mubr.bf16.gmra.mrb[80].mxu0 %v736_v15 }
 0x233   :  { %v649_v19 = vpop.f32.mrb[82].mxu1  ;;  %1471 = vmatprep.mubr.msk.bf16.mxu0 %vm1552_vm0, %v1551_v0 }
 0x234   :  { %v696_v20 = vpack.c.bf16 %v649_v19, %v646_v16  ;;  %v1390_v21 = vpop.f32.mrb[83].mxu1 }
 0x236   :  { %v720_v22 = vadd.bf16 %v1883_v54, %v696_v20 }
 0x238   :  { %v737_v23 = vmax.bf16 %v1553_v52, %v720_v22 }
 0x239   :  { %v654_v24 = vpop.f32.mrb[84].mxu1 }
 0x23a   :  { %v1393_v25 = vpop.f32.mrb[85].mxu1  ;;  %1472 = vmatmul.mubr.bf16.gmra.mrb[84].mxu0 %v737_v23 }
 0x23b   :  { %v657_v26 = vpop.f32.mrb[86].mxu1  ;;  %1475 = vmatprep.mubr.msk.bf16.mxu0 %vm1552_vm0, %v1551_v0 }
 0x23c   :  { %v697_v27 = vpack.c.bf16 %v657_v26, %v654_v24  ;;  %v1394_v28 = vpop.f32.mrb[87].mxu1 }
 0x23e   :  { %v721_v29 = vadd.bf16 %v1883_v54, %v697_v27 }
 0x240   :  { %v738_v30 = vmax.bf16 %v1553_v52, %v721_v29 }
 0x241   :  { %v662_v31 = vpop.f32.mrb[88].mxu1 }
 0x242   :  { %v1397_v32 = vpop.f32.mrb[89].mxu1  ;;  %1476 = vmatmul.mubr.bf16.gmra.mrb[88].mxu0 %v738_v30 }
 0x243   :  { %v665_v34 = vpop.f32.mrb[90].mxu1  ;;  %1479 = vmatprep.mubr.msk.bf16.mxu0 %vm1552_vm0, %v1551_v0 }
 0x244   :  { %v698_v36 = vpack.c.bf16 %v665_v34, %v662_v31  ;;  %v1398_v37 = vpop.f32.mrb[91].mxu1 }
 0x246   :  { %v722_v39 = vadd.bf16 %v1883_v54, %v698_v36 }
 0x248   :  { %v739_v40 = vmax.bf16 %v1553_v52, %v722_v39 }
 0x249   :  { %v670_v41 = vpop.f32.mrb[92].mxu1 }
 0x24a   :  { %v1401_v43 = vpop.f32.mrb[93].mxu1  ;;  %1480 = vmatmul.mubr.bf16.gmra.mrb[92].mxu0 %v739_v40 }
 0x24b   :  { %v673_v44 = vpop.f32.mrb[94].mxu1  ;;  %1483 = vmatprep.mubr.msk.bf16.mxu0 %vm1552_vm0, %v1551_v0 }
 0x24c   :  { %v699_v45 = vpack.c.bf16 %v673_v44, %v670_v41  ;;  %v1402_v42 = vpop.f32.mrb[95].mxu1 }
 0x24e   :  { %v723_v46 = vadd.bf16 %v1883_v54, %v699_v45 }
 0x250   :  { %v740_v51 = vmax.bf16 %v1553_v52, %v723_v46 }
 0x251   :  { %v678_v3 = vpop.f32.mrb[96].mxu1 }
 0x252   :  { %v700_v18 = vpack.c.bf16 %v678_v3, %v678_v3  ;;  %v1405_v47 = vpop.f32.mrb[97].mxu1  ;;  %1484 = vmatmul.mubr.bf16.gmra.mrb[96].mxu0 %v740_v51 }
 0x253   :  { %v681_v33 = vpop.f32.mrb[98].mxu1  ;;  %1487 = vmatprep.mubr.msk.bf16.mxu0 %vm1552_vm0, %v1551_v0 }
 0x254   :  { %v724_v48 = vadd.bf16 %v1883_v54, %v700_v18  ;;  %v1406_v49 = vpop.f32.mrb[99].mxu1 }
 0x256   :  { %v741_v50 = vmax.bf16 %v1553_v52, %v724_v48 }
 0x25a   :  { %1488 = vmatmul.mubr.bf16.gmra.mrb[100].mxu0 %v741_v50 }
 0x2ad   :  { %v845_v58 = vpop.f32.mrb[36].mxu0 }
 0x2ae   :  { %v846_v0 = vadd.f32 %v845_v58, %v1955_v55  ;;  %v1425_v54 = vpop.f32.mrb[37].mxu0 }
 0x2af   :  { %v848_v60 = vpop.f32.mrb[38].mxu0 }
 0x2b0   :  { %v979_v52 = vmax.f32 %v846_v0, 0.0  ;;  %v849_v62 = vadd.f32 %v848_v60, %v1955_v55  ;;  %v1426_v63 = vpop.f32.mrb[39].mxu0 }
 0x2b2   :  { %v1016_v38 = vmul.f32 %v1960_v59, %v979_v52  ;;  %v980_v1 = vmax.f32 %v849_v62, 0.0 }
 0x2b4   :  { %v1053_v2 = vadd.f32 %v1962_v61, %v1016_v38  ;;  %v1017_v35 = vmul.f32 %v1960_v59, %v980_v1 }
 0x2b5   :  { %v853_v4 = vpop.f32.mrb[40].mxu0 }
 0x2b6   :  { %1086 = vst [vmem:[%s2168_s7] sm:$0xff] %v1053_v2  ;;  %v1054_v5 = vadd.f32 %v1962_v61, %v1017_v35  ;;  %v854_v6 = vadd.f32 %v853_v4, %v1955_v55  ;;  %v1429_v7 = vpop.f32.mrb[41].mxu0 }
 0x2b7   :  { %v856_v8 = vpop.f32.mrb[42].mxu0 }
 0x2b8   :  { %1087 = vst [vmem:[%s2168_s7 + $0x8] sm:$0xff] %v1054_v5  ;;  %v981_v9 = vmax.f32 %v854_v6, 0.0  ;;  %v857_v10 = vadd.f32 %v856_v8, %v1955_v55  ;;  %v1430_v11 = vpop.f32.mrb[43].mxu0 }
 0x2ba   :  { %v1018_v12 = vmul.f32 %v1960_v59, %v981_v9  ;;  %v982_v13 = vmax.f32 %v857_v10, 0.0 }
 0x2bc   :  { %v1055_v14 = vadd.f32 %v1962_v61, %v1018_v12  ;;  %v1019_v15 = vmul.f32 %v1960_v59, %v982_v13 }
 0x2bd   :  { %v861_v16 = vpop.f32.mrb[44].mxu0 }
 0x2be   :  { %1088 = vst [vmem:[%s2168_s7 + $0x10] sm:$0xff] %v1055_v14  ;;  %v1056_v17 = vadd.f32 %v1962_v61, %v1019_v15  ;;  %v862_v19 = vadd.f32 %v861_v16, %v1955_v55  ;;  %v1433_v20 = vpop.f32.mrb[45].mxu0 }
 0x2bf   :  { %v864_v21 = vpop.f32.mrb[46].mxu0 }
 0x2c0   :  { %1089 = vst [vmem:[%s2168_s7 + $0x18] sm:$0xff] %v1056_v17  ;;  %v983_v22 = vmax.f32 %v862_v19, 0.0  ;;  %v865_v23 = vadd.f32 %v864_v21, %v1955_v55  ;;  %v1434_v24 = vpop.f32.mrb[47].mxu0 }
 0x2c2   :  { %v1020_v25 = vmul.f32 %v1960_v59, %v983_v22  ;;  %v984_v26 = vmax.f32 %v865_v23, 0.0 }
 0x2c4   :  { %v1057_v27 = vadd.f32 %v1962_v61, %v1020_v25  ;;  %v1021_v28 = vmul.f32 %v1960_v59, %v984_v26 }
 0x2c5   :  { %v869_v29 = vpop.f32.mrb[48].mxu0 }
 0x2c6   :  { %1090 = vst [vmem:[%s2168_s7 + $0x20] sm:$0xff] %v1057_v27  ;;  %v1058_v30 = vadd.f32 %v1962_v61, %v1021_v28  ;;  %v870_v31 = vadd.f32 %v869_v29, %v1955_v55  ;;  %v1437_v32 = vpop.f32.mrb[49].mxu0 }
 0x2c7   :  { %v872_v34 = vpop.f32.mrb[50].mxu0 }
 0x2c8   :  { %1091 = vst [vmem:[%s2168_s7 + $0x28] sm:$0xff] %v1058_v30  ;;  %v985_v36 = vmax.f32 %v870_v31, 0.0  ;;  %v873_v37 = vadd.f32 %v872_v34, %v1955_v55  ;;  %v1438_v39 = vpop.f32.mrb[51].mxu0 }
 0x2ca   :  { %v1022_v40 = vmul.f32 %v1960_v59, %v985_v36  ;;  %v986_v41 = vmax.f32 %v873_v37, 0.0 }
 0x2cc   :  { %v1059_v43 = vadd.f32 %v1962_v61, %v1022_v40  ;;  %v1023_v44 = vmul.f32 %v1960_v59, %v986_v41 }
 0x2cd   :  { %v877_v45 = vpop.f32.mrb[52].mxu0 }
 0x2ce   :  { %1092 = vst [vmem:[%s2168_s7 + $0x30] sm:$0xff] %v1059_v43  ;;  %v1060_v42 = vadd.f32 %v1962_v61, %v1023_v44  ;;  %v878_v46 = vadd.f32 %v877_v45, %v1955_v55  ;;  %v1441_v51 = vpop.f32.mrb[53].mxu0 }
 0x2cf   :  { %v880_v3 = vpop.f32.mrb[54].mxu0 }
 0x2d0   :  { %1093 = vst [vmem:[%s2168_s7 + $0x38] sm:$0xff] %v1060_v42  ;;  %v987_v18 = vmax.f32 %v878_v46, 0.0  ;;  %v881_v47 = vadd.f32 %v880_v3, %v1955_v55  ;;  %v1442_v33 = vpop.f32.mrb[55].mxu0 }
 0x2d2   :  { %v1024_v48 = vmul.f32 %v1960_v59, %v987_v18  ;;  %v988_v49 = vmax.f32 %v881_v47, 0.0 }
 0x2d4   :  { %v1061_v50 = vadd.f32 %v1962_v61, %v1024_v48  ;;  %v1025_v53 = vmul.f32 %v1960_v59, %v988_v49 }
 0x2d5   :  { %v885_v56 = vpop.f32.mrb[56].mxu0 }
 0x2d6   :  { %1094 = vst [vmem:[%s2168_s7 + $0x40] sm:$0xff] %v1061_v50  ;;  %v1062_v57 = vadd.f32 %v1962_v61, %v1025_v53  ;;  %v886_v58 = vadd.f32 %v885_v56, %v1955_v55  ;;  %v1445_v0 = vpop.f32.mrb[57].mxu0 }
 0x2d7   :  { %v888_v54 = vpop.f32.mrb[58].mxu0 }
 0x2d8   :  { %1095 = vst [vmem:[%s2168_s7 + $0x48] sm:$0xff] %v1062_v57  ;;  %v989_v60 = vmax.f32 %v886_v58, 0.0  ;;  %v889_v52 = vadd.f32 %v888_v54, %v1955_v55  ;;  %v1446_v62 = vpop.f32.mrb[59].mxu0 }
 0x2da   :  { %v1026_v63 = vmul.f32 %v1960_v59, %v989_v60  ;;  %v990_v38 = vmax.f32 %v889_v52, 0.0 }
 0x2dc   :  { %v1063_v1 = vadd.f32 %v1962_v61, %v1026_v63  ;;  %v1027_v2 = vmul.f32 %v1960_v59, %v990_v38 }
 0x2dd   :  { %v893_v35 = vpop.f32.mrb[60].mxu0 }
 0x2de   :  { %1096 = vst [vmem:[%s2168_s7 + $0x50] sm:$0xff] %v1063_v1  ;;  %v1064_v4 = vadd.f32 %v1962_v61, %v1027_v2  ;;  %v894_v5 = vadd.f32 %v893_v35, %v1955_v55  ;;  %v1449_v6 = vpop.f32.mrb[61].mxu0 }
 0x2df   :  { %v896_v7 = vpop.f32.mrb[62].mxu0 }
 0x2e0   :  { %1097 = vst [vmem:[%s2168_s7 + $0x58] sm:$0xff] %v1064_v4  ;;  %v991_v8 = vmax.f32 %v894_v5, 0.0  ;;  %v897_v9 = vadd.f32 %v896_v7, %v1955_v55  ;;  %v1450_v10 = vpop.f32.mrb[63].mxu0 }
 0x2e2   :  { %v1028_v11 = vmul.f32 %v1960_v59, %v991_v8  ;;  %v992_v12 = vmax.f32 %v897_v9, 0.0 }
 0x2e4   :  { %v1065_v13 = vadd.f32 %v1962_v61, %v1028_v11  ;;  %v1029_v14 = vmul.f32 %v1960_v59, %v992_v12 }
 0x2e5   :  { %v901_v15 = vpop.f32.mrb[64].mxu0 }
 0x2e6   :  { %1098 = vst [vmem:[%s2168_s7 + $0x60] sm:$0xff] %v1065_v13  ;;  %v1066_v16 = vadd.f32 %v1962_v61, %v1029_v14  ;;  %v902_v17 = vadd.f32 %v901_v15, %v1955_v55  ;;  %v1453_v19 = vpop.f32.mrb[65].mxu0 }
 0x2e7   :  { %v904_v20 = vpop.f32.mrb[66].mxu0 }
 0x2e8   :  { %1099 = vst [vmem:[%s2168_s7 + $0x68] sm:$0xff] %v1066_v16  ;;  %v993_v21 = vmax.f32 %v902_v17, 0.0  ;;  %v905_v22 = vadd.f32 %v904_v20, %v1955_v55  ;;  %v1454_v23 = vpop.f32.mrb[67].mxu0 }
 0x2ea   :  { %v1030_v24 = vmul.f32 %v1960_v59, %v993_v21  ;;  %v994_v25 = vmax.f32 %v905_v22, 0.0 }
 0x2ec   :  { %v1067_v26 = vadd.f32 %v1962_v61, %v1030_v24  ;;  %v1031_v27 = vmul.f32 %v1960_v59, %v994_v25 }
 0x2ed   :  { %v909_v28 = vpop.f32.mrb[68].mxu0 }
 0x2ee   :  { %1100 = vst [vmem:[%s2168_s7 + $0x70] sm:$0xff] %v1067_v26  ;;  %v1068_v29 = vadd.f32 %v1962_v61, %v1031_v27  ;;  %v910_v30 = vadd.f32 %v909_v28, %v1955_v55  ;;  %v1457_v31 = vpop.f32.mrb[69].mxu0 }
 0x2ef   :  { %v912_v32 = vpop.f32.mrb[70].mxu0 }
 0x2f0   :  { %1101 = vst [vmem:[%s2168_s7 + $0x78] sm:$0xff] %v1068_v29  ;;  %v995_v34 = vmax.f32 %v910_v30, 0.0  ;;  %v913_v36 = vadd.f32 %v912_v32, %v1955_v55  ;;  %v1458_v37 = vpop.f32.mrb[71].mxu0 }
 0x2f2   :  { %v1032_v39 = vmul.f32 %v1960_v59, %v995_v34  ;;  %v996_v40 = vmax.f32 %v913_v36, 0.0 }
 0x2f4   :  { %v1069_v41 = vadd.f32 %v1962_v61, %v1032_v39  ;;  %v1033_v43 = vmul.f32 %v1960_v59, %v996_v40 }
 0x2f5   :  { %v917_v44 = vpop.f32.mrb[72].mxu0 }
 0x2f6   :  { %1102 = vst [vmem:[%s2168_s7 + $0x80] sm:$0xff] %v1069_v41  ;;  %v1070_v45 = vadd.f32 %v1962_v61, %v1033_v43  ;;  %v918_v42 = vadd.f32 %v917_v44, %v1955_v55  ;;  %v1461_v46 = vpop.f32.mrb[73].mxu0 }
 0x2f7   :  { %v920_v51 = vpop.f32.mrb[74].mxu0 }
 0x2f8   :  { %1103 = vst [vmem:[%s2168_s7 + $0x88] sm:$0xff] %v1070_v45  ;;  %v997_v3 = vmax.f32 %v918_v42, 0.0  ;;  %v921_v18 = vadd.f32 %v920_v51, %v1955_v55  ;;  %v1462_v47 = vpop.f32.mrb[75].mxu0 }
 0x2fa   :  { %v1034_v33 = vmul.f32 %v1960_v59, %v997_v3  ;;  %v998_v48 = vmax.f32 %v921_v18, 0.0 }
 0x2fc   :  { %v1071_v49 = vadd.f32 %v1962_v61, %v1034_v33  ;;  %v1035_v50 = vmul.f32 %v1960_v59, %v998_v48 }
 0x2fd   :  { %v925_v53 = vpop.f32.mrb[76].mxu0 }
 0x2fe   :  { %1104 = vst [vmem:[%s2168_s7 + $0x90] sm:$0xff] %v1071_v49  ;;  %v1072_v56 = vadd.f32 %v1962_v61, %v1035_v50  ;;  %v926_v57 = vadd.f32 %v925_v53, %v1955_v55  ;;  %v1465_v58 = vpop.f32.mrb[77].mxu0 }
 0x2ff   :  { %v928_v0 = vpop.f32.mrb[78].mxu0 }
 0x300   :  { %1105 = vst [vmem:[%s2168_s7 + $0x98] sm:$0xff] %v1072_v56  ;;  %v999_v54 = vmax.f32 %v926_v57, 0.0  ;;  %v929_v60 = vadd.f32 %v928_v0, %v1955_v55  ;;  %v1466_v52 = vpop.f32.mrb[79].mxu0 }
 0x302   :  { %v1036_v62 = vmul.f32 %v1960_v59, %v999_v54  ;;  %v1000_v63 = vmax.f32 %v929_v60, 0.0 }
 0x304   :  { %v1073_v38 = vadd.f32 %v1962_v61, %v1036_v62  ;;  %v1037_v1 = vmul.f32 %v1960_v59, %v1000_v63 }
 0x305   :  { %v933_v2 = vpop.f32.mrb[80].mxu0 }
 0x306   :  { %1106 = vst [vmem:[%s2168_s7 + $0xa0] sm:$0xff] %v1073_v38  ;;  %v1074_v35 = vadd.f32 %v1962_v61, %v1037_v1  ;;  %v934_v4 = vadd.f32 %v933_v2, %v1955_v55  ;;  %v1469_v5 = vpop.f32.mrb[81].mxu0 }
 0x307   :  { %v936_v6 = vpop.f32.mrb[82].mxu0 }
 0x308   :  { %1107 = vst [vmem:[%s2168_s7 + $0xa8] sm:$0xff] %v1074_v35  ;;  %v1001_v7 = vmax.f32 %v934_v4, 0.0  ;;  %v937_v8 = vadd.f32 %v936_v6, %v1955_v55  ;;  %v1470_v9 = vpop.f32.mrb[83].mxu0 }
 0x30a   :  { %v1038_v10 = vmul.f32 %v1960_v59, %v1001_v7  ;;  %v1002_v11 = vmax.f32 %v937_v8, 0.0 }
 0x30c   :  { %v1075_v12 = vadd.f32 %v1962_v61, %v1038_v10  ;;  %v1039_v13 = vmul.f32 %v1960_v59, %v1002_v11 }
 0x30d   :  { %v941_v14 = vpop.f32.mrb[84].mxu0 }
 0x30e   :  { %1108 = vst [vmem:[%s2168_s7 + $0xb0] sm:$0xff] %v1075_v12  ;;  %v1076_v15 = vadd.f32 %v1962_v61, %v1039_v13  ;;  %v942_v16 = vadd.f32 %v941_v14, %v1955_v55  ;;  %v1473_v17 = vpop.f32.mrb[85].mxu0 }
 0x30f   :  { %v944_v19 = vpop.f32.mrb[86].mxu0 }
 0x310   :  { %1109 = vst [vmem:[%s2168_s7 + $0xb8] sm:$0xff] %v1076_v15  ;;  %v1003_v20 = vmax.f32 %v942_v16, 0.0  ;;  %v945_v21 = vadd.f32 %v944_v19, %v1955_v55  ;;  %v1474_v22 = vpop.f32.mrb[87].mxu0 }
 0x312   :  { %v1040_v23 = vmul.f32 %v1960_v59, %v1003_v20  ;;  %v1004_v24 = vmax.f32 %v945_v21, 0.0 }
 0x314   :  { %v1077_v25 = vadd.f32 %v1962_v61, %v1040_v23  ;;  %v1041_v26 = vmul.f32 %v1960_v59, %v1004_v24 }
 0x315   :  { %v949_v27 = vpop.f32.mrb[88].mxu0 }
 0x316   :  { %1110 = vst [vmem:[%s2168_s7 + $0xc0] sm:$0xff] %v1077_v25  ;;  %v1078_v28 = vadd.f32 %v1962_v61, %v1041_v26  ;;  %v950_v29 = vadd.f32 %v949_v27, %v1955_v55  ;;  %v1477_v30 = vpop.f32.mrb[89].mxu0 }
 0x317   :  { %v952_v31 = vpop.f32.mrb[90].mxu0 }
 0x318   :  { %1111 = vst [vmem:[%s2168_s7 + $0xc8] sm:$0xff] %v1078_v28  ;;  %v1005_v32 = vmax.f32 %v950_v29, 0.0  ;;  %v953_v34 = vadd.f32 %v952_v31, %v1955_v55  ;;  %v1478_v36 = vpop.f32.mrb[91].mxu0 }
 0x31a   :  { %v1042_v37 = vmul.f32 %v1960_v59, %v1005_v32  ;;  %v1006_v39 = vmax.f32 %v953_v34, 0.0 }
 0x31c   :  { %v1079_v40 = vadd.f32 %v1962_v61, %v1042_v37  ;;  %v1043_v41 = vmul.f32 %v1960_v59, %v1006_v39 }
 0x31d   :  { %v957_v43 = vpop.f32.mrb[92].mxu0 }
 0x31e   :  { %1112 = vst [vmem:[%s2168_s7 + $0xd0] sm:$0xff] %v1079_v40  ;;  %v1080_v44 = vadd.f32 %v1962_v61, %v1043_v41  ;;  %v958_v45 = vadd.f32 %v957_v43, %v1955_v55  ;;  %v1481_v42 = vpop.f32.mrb[93].mxu0 }
 0x31f   :  { %v960_v46 = vpop.f32.mrb[94].mxu0 }
 0x320   :  { %1113 = vst [vmem:[%s2168_s7 + $0xd8] sm:$0xff] %v1080_v44  ;;  %v1007_v51 = vmax.f32 %v958_v45, 0.0  ;;  %v961_v3 = vadd.f32 %v960_v46, %v1955_v55  ;;  %v1482_v18 = vpop.f32.mrb[95].mxu0 }
 0x322   :  { %v1044_v47 = vmul.f32 %v1960_v59, %v1007_v51  ;;  %v1008_v33 = vmax.f32 %v961_v3, 0.0 }
 0x324   :  { %v1081_v48 = vadd.f32 %v1962_v61, %v1044_v47  ;;  %v1045_v49 = vmul.f32 %v1960_v59, %v1008_v33 }
 0x325   :  { %v965_v50 = vpop.f32.mrb[96].mxu0 }
 0x326   :  { %1114 = vst [vmem:[%s2168_s7 + $0xe0] sm:$0xff] %v1081_v48  ;;  %v1082_v53 = vadd.f32 %v1962_v61, %v1045_v49  ;;  %v966_v56 = vadd.f32 %v965_v50, %v1955_v55  ;;  %v1485_v57 = vpop.f32.mrb[97].mxu0 }
 0x327   :  { %v968_v58 = vpop.f32.mrb[98].mxu0 }
 0x328   :  { %1115 = vst [vmem:[%s2168_s7 + $0xe8] sm:$0xff] %v1082_v53  ;;  %v1009_v0 = vmax.f32 %v966_v56, 0.0  ;;  %v969_v54 = vadd.f32 %v968_v58, %v1955_v55  ;;  %v1486_v60 = vpop.f32.mrb[99].mxu0 }
 0x32a   :  { %v1046_v52 = vmul.f32 %v1960_v59, %v1009_v0  ;;  %v1010_v62 = vmax.f32 %v969_v54, 0.0 }
 0x32c   :  { %v1083_v63 = vadd.f32 %v1962_v61, %v1046_v52  ;;  %v1047_v38 = vmul.f32 %v1960_v59, %v1010_v62 }
 0x32d   :  { %v973_v1 = vpop.f32.mrb[100].mxu0 }
 0x32e   :  { %1116 = vst [vmem:[%s2168_s7 + $0xf0] sm:$0xff] %v1083_v63  ;;  %v1084_v2 = vadd.f32 %v1962_v61, %v1047_v38  ;;  %v974_v35 = vadd.f32 %v973_v1, %v1955_v55  ;;  %v1489_v4 = vpop.f32.mrb[101].mxu0 }
 0x32f   :  { %v976_v5 = vpop.f32.mrb[102].mxu0 }
 0x330   :  { %1117 = vst [vmem:[%s2168_s7 + $0xf8] sm:$0xff] %v1084_v2  ;;  %v1011_v6 = vmax.f32 %v974_v35, 0.0  ;;  %v1490_v7 = vpop.f32.mrb[103].mxu0 }
 0x332   :  { %v1048_v8 = vmul.f32 %v1960_v59, %v1011_v6 }
 0x334   :  { %v1085_v9 = vadd.f32 %v1962_v61, %v1048_v8 }
 0x336   :  { %1118 = vst [vmem:[%s2168_s7 + $0x100] sm:$0xff] %v1085_v9 }

</bundles_post_ra>
